<compile_context>
chip_gen: v5e
topology: v5e:2x2
jax: 0.10.0
libtpu: 0.0.40
codegen_flags: <defaults>
</compile_context>

<pallas_src>
import numpy as np
import jax
import jax.numpy as jnp
from jax.experimental import pallas as pl
from jax.experimental.pallas import tpu as pltpu


def _swish(v):
    return v * jax.nn.sigmoid(v)


# --------------------------------- kernel ----------------------------------

def _fused_block_kernel(x_ref, w1_ref, wr_ref, w2_ref,
                        b1_ref, br_ref, b2_ref,
                        ph_ref, pw_ref,
                        out_ref, pad_s):
    """Whole res-block (+ avg-pool) for one image, fully in VMEM.

    x_ref : (H, W*Cin)                  image, lanes carry W*Cin
    w*_ref: (3, W*Cin, W*Cout)          banded weights, one matrix per kh tap
    b*_ref: (1, W*Cout)                 bias tiled across W
    ph_ref: (H//2, H), pw_ref: (W*Cout, (W//2)*Cout)   avg-pool matrices
    out   : (H//2, (W//2)*Cout)
    pad_s : (H+2, W*Cin) VMEM scratch with a 1-row height halo (reused for
            padded x and then padded h1).
    """
    H = x_ref.shape[0]
    f32 = jnp.float32

    zero_row = jnp.zeros((1, pad_s.shape[1]), f32)

    # Height-halo padded input lives in scratch; the width halo is folded into
    # the banded weights, so no jnp.pad and no HBM intermediates.
    pad_s[0:1, :] = zero_row
    pad_s[H + 1:H + 2, :] = zero_row
    pad_s[1:H + 1, :] = x_ref[...].astype(f32)

    def conv3x3(src_ref, w_ref, b_ref):
        n = w_ref.shape[-1]
        acc = jnp.zeros((H, n), f32)
        for kh in range(3):                     # 3 lane-dense MXU matmuls
            acc += jnp.dot(src_ref[kh:kh + H, :], w_ref[kh],
                           preferred_element_type=f32)
        return acc + b_ref[...]

    # conv1 + swish and res + swish both consume padded x, so compute them
    # before the scratch is recycled for h1.
    h1 = _swish(conv3x3(pad_s, w1_ref, b1_ref))
    hr = _swish(conv3x3(pad_s, wr_ref, br_ref))

    # Reuse the same halo scratch for padded h1 (halo rows already zero;
    # conv1 is Cin->Cin so the widths match).
    pad_s[1:H + 1, :] = h1
    h2 = _swish(conv3x3(pad_s, w2_ref, b2_ref))

    s = h2 + hr

    # 2x2 average pooling as two small matmuls: Ph @ (s @ Pw).
    pooled = jnp.dot(ph_ref[...],
                     jnp.dot(s, pw_ref[...], preferred_element_type=f32),
                     preferred_element_type=f32)
    out_ref[...] = pooled.astype(out_ref.dtype)


# ------------------------------ wrapper glue --------------------------------

def _band_weights(w_hwio, W):
    """(3,3,Cin,Cout) HWIO weight -> (3, W*Cin, W*Cout) banded matrices.

    M[kh][w_in*Cin + ci, w_out*Cout + co] = w_hwio[kh, kw, ci, co]
    for w_in = w_out + kw - 1 (zero when out of range), i.e. the width taps
    and the width zero-padding of the SAME conv are folded into the matmul.
    """
    mats = []
    for kh in range(3):
        m = 0.0
        for kw in range(3):
            shift = np.eye(W, k=1 - kw, dtype=np.float32)   # shifted identity
            m = m + jnp.kron(jnp.asarray(shift), w_hwio[kh, kw])
        mats.append(m)
    return jnp.stack(mats, axis=0)


def _pool_mats(H, W, c_out):
    """Constant matrices realizing AvgPool2d(2, stride=2) as Ph @ s @ Pw."""
    ph = np.kron(np.eye(H // 2, dtype=np.float32),
                 np.array([[0.5, 0.5]], np.float32))             # (H//2, H)
    pw = np.kron(np.kron(np.eye(W // 2, dtype=np.float32),
                         np.array([[0.5], [0.5]], np.float32)),
                 np.eye(c_out, dtype=np.float32))                # (W*Cout, (W//2)*Cout)
    return jnp.asarray(ph), jnp.asarray(pw)


def block_forward(x_nchw, params):
    """Forward matching the PyTorch module (NCHW in, NCHW out, pooled)."""
    B, n_in, H, W = x_nchw.shape
    n_out = params["w2_oihw"].shape[0]
    assert H % 2 == 0 and W % 2 == 0, "AvgPool2d(2,2) path assumes even H, W"

    def hwio(w_oihw):                       # OIHW -> HWIO
        return jnp.transpose(w_oihw, (2, 3, 1, 0))

    w1 = _band_weights(hwio(params["w1_oihw"]), W)      # (3, W*n_in, W*n_in)
    w2 = _band_weights(hwio(params["w2_oihw"]), W)      # (3, W*n_in, W*n_out)
    wr = _band_weights(hwio(params["wr_oihw"]), W)      # (3, W*n_in, W*n_out)
    b1 = jnp.tile(params["b1"], W)[None, :]             # (1, W*n_in)
    b2 = jnp.tile(params["b2"], W)[None, :]             # (1, W*n_out)
    br = jnp.tile(params["br"], W)[None, :]
    ph, pw = _pool_mats(H, W, n_out)

    # NCHW -> (B, H, W*Cin): lanes carry W*C.
    x = jnp.transpose(x_nchw, (0, 2, 3, 1)).reshape(B, H, W * n_in)

    Ho, Wo = H // 2, W // 2
    out_flat = pl.pallas_call(
        _fused_block_kernel,
        out_shape=jax.ShapeDtypeStruct((B, Ho, Wo * n_out), x.dtype),
        grid=(B,),
        in_specs=[
            pl.BlockSpec((None, H, W * n_in), lambda b: (b, 0, 0)),
            pl.BlockSpec(w1.shape, lambda b: (0, 0, 0)),
            pl.BlockSpec(wr.shape, lambda b: (0, 0, 0)),
            pl.BlockSpec(w2.shape, lambda b: (0, 0, 0)),
            pl.BlockSpec(b1.shape, lambda b: (0, 0)),
            pl.BlockSpec(br.shape, lambda b: (0, 0)),
            pl.BlockSpec(b2.shape, lambda b: (0, 0)),
            pl.BlockSpec(ph.shape, lambda b: (0, 0)),
            pl.BlockSpec(pw.shape, lambda b: (0, 0)),
        ],
        out_specs=pl.BlockSpec((None, Ho, Wo * n_out), lambda b: (b, 0, 0)),
        scratch_shapes=[pltpu.VMEM((H + 2, W * n_in), jnp.float32)],
        compiler_params=pltpu.CompilerParams(
            dimension_semantics=("parallel",)),   # independent images; 2 TCs on v7x
    )(x, w1, wr, w2, b1, br, b2, ph, pw)

    out = out_flat.reshape(B, Ho, Wo, n_out)
    return jnp.transpose(out, (0, 3, 1, 2))       # NHWC -> NCHW


# ---------------------------- reference (plain JAX) --------------------------

def _ref_forward(x_nchw, params):
    def hwio(w_oihw):
        return jnp.transpose(w_oihw, (2, 3, 1, 0))

    def conv(v, w_oihw, b):
        y = jax.lax.conv_general_dilated(
            v, hwio(w_oihw), window_strides=(1, 1), padding="SAME",
            dimension_numbers=("NHWC", "HWIO", "NHWC"),
            precision=jax.lax.Precision.HIGHEST)
        return y + b

    x = jnp.transpose(x_nchw, (0, 2, 3, 1))
    h1 = _swish(conv(x, params["w1_oihw"], params["b1"]))
    h2 = _swish(conv(h1, params["w2_oihw"], params["b2"]))
    hr = _swish(conv(x, params["wr_oihw"], params["br"]))
    s = h2 + hr
    B, H, W, C = s.shape
    pooled = s.reshape(B, H // 2, 2, W // 2, 2, C).mean(axis=(2, 4))
    return jnp.transpose(pooled, (0, 3, 1, 2))


# ----------------------------------- main ------------------------------------

if __name__ == "__main__":
    B, n_in, n_out, H, W = 2, 4, 8, 16, 16

    key = jax.random.PRNGKey(0)
    k_x, k1, kb1, k2, kb2, kr, kbr = jax.random.split(key, 7)

    def make_w(k, cout, cin):                 # PyTorch Conv2d layout: OIHW
        return 0.1 * jax.random.normal(k, (cout, cin, 3, 3), jnp.float32)

    params = {
        "w1_oihw": make_w(k1, n_in, n_in),
        "b1": 0.1 * jax.random.normal(kb1, (n_in,), jnp.float32),
        "w2_oihw": make_w(k2, n_out, n_in),
        "b2": 0.1 * jax.random.normal(kb2, (n_out,), jnp.float32),
        "wr_oihw": make_w(kr, n_out, n_in),
        "br": 0.1 * jax.random.normal(kbr, (n_out,), jnp.float32),
    }

    x = jax.random.normal(k_x, (B, n_in, H, W), jnp.float32)   # NCHW

    fwd = jax.jit(block_forward)
    out = jax.block_until_ready(fwd(x, params))
    ref = jax.block_until_ready(_ref_forward(x, params))

    assert out.shape == (B, n_out, H // 2, W // 2), out.shape
    err = float(jnp.max(jnp.abs(out - ref)))
    assert jnp.allclose(out, ref, atol=5e-4, rtol=5e-4), err
    print("KERNEL_OK")
</pallas_src>

<mosaic_0001>
module attributes {stable_mosaic.version = 11 : i64} {
  func.func @_fused_block_kernel(%arg0: i32, %arg1: memref<1x16x64xf32, #tpu.memory_space<vmem>>, %arg2: memref<3x64x64xf32, #tpu.memory_space<vmem>>, %arg3: memref<3x64x128xf32, #tpu.memory_space<vmem>>, %arg4: memref<3x64x128xf32, #tpu.memory_space<vmem>>, %arg5: memref<1x64xf32, #tpu.memory_space<vmem>>, %arg6: memref<1x128xf32, #tpu.memory_space<vmem>>, %arg7: memref<1x128xf32, #tpu.memory_space<vmem>>, %arg8: memref<8x16xf32, #tpu.memory_space<vmem>>, %arg9: memref<128x64xf32, #tpu.memory_space<vmem>>, %arg10: memref<1x8x64xf32, #tpu.memory_space<vmem>>, %arg11: memref<18x64xf32, #tpu.memory_space<vmem>>) attributes {dimension_semantics = [#tpu.dimension_semantics<parallel>], iteration_bounds = array<i64: 2>, scalar_prefetch = 0 : i64, scratch_operands = 1 : i64, tpu.core_type = #tpu.core_type<tc>, window_params = [{transform_indices = @transform_0, window_bounds = array<i64: 1, 16, 64>}, {pipeline_mode = #tpu.pipeline_mode<synchronous>, transform_indices = @transform_1, window_bounds = array<i64: 3, 64, 64>}, {pipeline_mode = #tpu.pipeline_mode<synchronous>, transform_indices = @transform_2, window_bounds = array<i64: 3, 64, 128>}, {pipeline_mode = #tpu.pipeline_mode<synchronous>, transform_indices = @transform_3, window_bounds = array<i64: 3, 64, 128>}, {pipeline_mode = #tpu.pipeline_mode<synchronous>, transform_indices = @transform_4, window_bounds = array<i64: 1, 64>}, {pipeline_mode = #tpu.pipeline_mode<synchronous>, transform_indices = @transform_5, window_bounds = array<i64: 1, 128>}, {pipeline_mode = #tpu.pipeline_mode<synchronous>, transform_indices = @transform_6, window_bounds = array<i64: 1, 128>}, {pipeline_mode = #tpu.pipeline_mode<synchronous>, transform_indices = @transform_7, window_bounds = array<i64: 8, 16>}, {pipeline_mode = #tpu.pipeline_mode<synchronous>, transform_indices = @transform_8, window_bounds = array<i64: 128, 64>}, {transform_indices = @transform_9, window_bounds = array<i64: 1, 8, 64>}]} {
    %cst = arith.constant 0.000000e+00 : f32
    %0 = vector.broadcast %cst : f32 to vector<1x64xf32>
    %c0 = arith.constant 0 : index
    %c0_0 = arith.constant 0 : index
    %1 = vector.load %arg11[%c0, %c0_0] : memref<18x64xf32, #tpu.memory_space<vmem>>, vector<1x64xf32>
    tpu.vector_store %arg11[%c0, %c0_0], %0 {strides = array<i32>} : memref<18x64xf32, #tpu.memory_space<vmem>>, vector<1x64xf32>,
    %c17 = arith.constant 17 : index
    %c0_1 = arith.constant 0 : index
    %2 = vector.load %arg11[%c17, %c0_1] : memref<18x64xf32, #tpu.memory_space<vmem>>, vector<1x64xf32>
    tpu.vector_store %arg11[%c17, %c0_1], %0 {strides = array<i32>} : memref<18x64xf32, #tpu.memory_space<vmem>>, vector<1x64xf32>,
    %c0_2 = arith.constant 0 : index
    %c0_3 = arith.constant 0 : index
    %c0_4 = arith.constant 0 : index
    %3 = vector.load %arg1[%c0_2, %c0_3, %c0_4] : memref<1x16x64xf32, #tpu.memory_space<vmem>>, vector<1x16x64xf32>
    %4 = vector.shape_cast %3 : vector<1x16x64xf32> to vector<16x64xf32>
    %c1 = arith.constant 1 : index
    %c0_5 = arith.constant 0 : index
    %5 = vector.load %arg11[%c1, %c0_5] : memref<18x64xf32, #tpu.memory_space<vmem>>, vector<16x64xf32>
    tpu.vector_store %arg11[%c1, %c0_5], %4 {strides = array<i32>} : memref<18x64xf32, #tpu.memory_space<vmem>>, vector<16x64xf32>,
    %cst_6 = arith.constant 0.000000e+00 : f32
    %6 = vector.broadcast %cst_6 : f32 to vector<16x64xf32>
    %c0_7 = arith.constant 0 : index
    %c0_8 = arith.constant 0 : index
    %7 = vector.load %arg11[%c0_7, %c0_8] : memref<18x64xf32, #tpu.memory_space<vmem>>, vector<16x64xf32>
    %c0_9 = arith.constant 0 : index
    %c0_10 = arith.constant 0 : index
    %c0_11 = arith.constant 0 : index
    %8 = vector.load %arg2[%c0_9, %c0_10, %c0_11] : memref<3x64x64xf32, #tpu.memory_space<vmem>>, vector<1x64x64xf32>
    %9 = vector.shape_cast %8 : vector<1x64x64xf32> to vector<64x64xf32>
    %cst_12 = arith.constant dense<0.000000e+00> : vector<16x64xf32>
    %10 = tpu.matmul %7, %9, %cst_12 {dimension_numbers = #tpu.dot_dimension_numbers<[1], [0], [0], [1], [0, 0, 1, 1], [], []>} : vector<16x64xf32>, vector<64x64xf32>, vector<16x64xf32> -> vector<16x64xf32>
    %11 = arith.addf %6, %10 : vector<16x64xf32>
    %c1_13 = arith.constant 1 : index
    %c0_14 = arith.constant 0 : index
    %12 = vector.load %arg11[%c1_13, %c0_14] : memref<18x64xf32, #tpu.memory_space<vmem>>, vector<16x64xf32>
    %c1_15 = arith.constant 1 : index
    %c0_16 = arith.constant 0 : index
    %c0_17 = arith.constant 0 : index
    %13 = vector.load %arg2[%c1_15, %c0_16, %c0_17] : memref<3x64x64xf32, #tpu.memory_space<vmem>>, vector<1x64x64xf32>
    %14 = vector.shape_cast %13 : vector<1x64x64xf32> to vector<64x64xf32>
    %cst_18 = arith.constant dense<0.000000e+00> : vector<16x64xf32>
    %15 = tpu.matmul %12, %14, %cst_18 {dimension_numbers = #tpu.dot_dimension_numbers<[1], [0], [0], [1], [0, 0, 1, 1], [], []>} : vector<16x64xf32>, vector<64x64xf32>, vector<16x64xf32> -> vector<16x64xf32>
    %16 = arith.addf %11, %15 : vector<16x64xf32>
    %c2 = arith.constant 2 : index
    %c0_19 = arith.constant 0 : index
    %17 = vector.load %arg11[%c2, %c0_19] : memref<18x64xf32, #tpu.memory_space<vmem>>, vector<16x64xf32>
    %c2_20 = arith.constant 2 : index
    %c0_21 = arith.constant 0 : index
    %c0_22 = arith.constant 0 : index
    %18 = vector.load %arg2[%c2_20, %c0_21, %c0_22] : memref<3x64x64xf32, #tpu.memory_space<vmem>>, vector<1x64x64xf32>
    %19 = vector.shape_cast %18 : vector<1x64x64xf32> to vector<64x64xf32>
    %cst_23 = arith.constant dense<0.000000e+00> : vector<16x64xf32>
    %20 = tpu.matmul %17, %19, %cst_23 {dimension_numbers = #tpu.dot_dimension_numbers<[1], [0], [0], [1], [0, 0, 1, 1], [], []>} : vector<16x64xf32>, vector<64x64xf32>, vector<16x64xf32> -> vector<16x64xf32>
    %21 = arith.addf %16, %20 : vector<16x64xf32>
    %c0_24 = arith.constant 0 : index
    %c0_25 = arith.constant 0 : index
    %22 = vector.load %arg5[%c0_24, %c0_25] : memref<1x64xf32, #tpu.memory_space<vmem>>, vector<1x64xf32>
    %23 = vector.broadcast %22 : vector<1x64xf32> to vector<16x64xf32>
    %24 = arith.addf %21, %23 : vector<16x64xf32>
    %25 = arith.negf %24 : vector<16x64xf32>
    %26 = math.exp %25 : vector<16x64xf32>
    %cst_26 = arith.constant 1.000000e+00 : f32
    %27 = vector.broadcast %cst_26 : f32 to vector<16x64xf32>
    %28 = arith.addf %27, %26 : vector<16x64xf32>
    %29 = arith.divf %27, %28 : vector<16x64xf32>
    %30 = arith.mulf %24, %29 : vector<16x64xf32>
    %cst_27 = arith.constant 0.000000e+00 : f32
    %31 = vector.broadcast %cst_27 : f32 to vector<16x128xf32>
    %c0_28 = arith.constant 0 : index
    %c0_29 = arith.constant 0 : index
    %32 = vector.load %arg11[%c0_28, %c0_29] : memref<18x64xf32, #tpu.memory_space<vmem>>, vector<16x64xf32>
    %c0_30 = arith.constant 0 : index
    %c0_31 = arith.constant 0 : index
    %c0_32 = arith.constant 0 : index
    %33 = vector.load %arg3[%c0_30, %c0_31, %c0_32] : memref<3x64x128xf32, #tpu.memory_space<vmem>>, vector<1x64x128xf32>
    %34 = vector.shape_cast %33 : vector<1x64x128xf32> to vector<64x128xf32>
    %cst_33 = arith.constant dense<0.000000e+00> : vector<16x128xf32>
    %35 = tpu.matmul %32, %34, %cst_33 {dimension_numbers = #tpu.dot_dimension_numbers<[1], [0], [0], [1], [0, 0, 1, 1], [], []>} : vector<16x64xf32>, vector<64x128xf32>, vector<16x128xf32> -> vector<16x128xf32>
    %36 = arith.addf %31, %35 : vector<16x128xf32>
    %c1_34 = arith.constant 1 : index
    %c0_35 = arith.constant 0 : index
    %37 = vector.load %arg11[%c1_34, %c0_35] : memref<18x64xf32, #tpu.memory_space<vmem>>, vector<16x64xf32>
    %c1_36 = arith.constant 1 : index
    %c0_37 = arith.constant 0 : index
    %c0_38 = arith.constant 0 : index
    %38 = vector.load %arg3[%c1_36, %c0_37, %c0_38] : memref<3x64x128xf32, #tpu.memory_space<vmem>>, vector<1x64x128xf32>
    %39 = vector.shape_cast %38 : vector<1x64x128xf32> to vector<64x128xf32>
    %cst_39 = arith.constant dense<0.000000e+00> : vector<16x128xf32>
    %40 = tpu.matmul %37, %39, %cst_39 {dimension_numbers = #tpu.dot_dimension_numbers<[1], [0], [0], [1], [0, 0, 1, 1], [], []>} : vector<16x64xf32>, vector<64x128xf32>, vector<16x128xf32> -> vector<16x128xf32>
    %41 = arith.addf %36, %40 : vector<16x128xf32>
    %c2_40 = arith.constant 2 : index
    %c0_41 = arith.constant 0 : index
    %42 = vector.load %arg11[%c2_40, %c0_41] : memref<18x64xf32, #tpu.memory_space<vmem>>, vector<16x64xf32>
    %c2_42 = arith.constant 2 : index
    %c0_43 = arith.constant 0 : index
    %c0_44 = arith.constant 0 : index
    %43 = vector.load %arg3[%c2_42, %c0_43, %c0_44] : memref<3x64x128xf32, #tpu.memory_space<vmem>>, vector<1x64x128xf32>
    %44 = vector.shape_cast %43 : vector<1x64x128xf32> to vector<64x128xf32>
    %cst_45 = arith.constant dense<0.000000e+00> : vector<16x128xf32>
    %45 = tpu.matmul %42, %44, %cst_45 {dimension_numbers = #tpu.dot_dimension_numbers<[1], [0], [0], [1], [0, 0, 1, 1], [], []>} : vector<16x64xf32>, vector<64x128xf32>, vector<16x128xf32> -> vector<16x128xf32>
    %46 = arith.addf %41, %45 : vector<16x128xf32>
    %c0_46 = arith.constant 0 : index
    %c0_47 = arith.constant 0 : index
    %47 = vector.load %arg6[%c0_46, %c0_47] : memref<1x128xf32, #tpu.memory_space<vmem>>, vector<1x128xf32>
    %48 = vector.broadcast %47 : vector<1x128xf32> to vector<16x128xf32>
    %49 = arith.addf %46, %48 : vector<16x128xf32>
    %50 = arith.negf %49 : vector<16x128xf32>
    %51 = math.exp %50 : vector<16x128xf32>
    %cst_48 = arith.constant 1.000000e+00 : f32
    %52 = vector.broadcast %cst_48 : f32 to vector<16x128xf32>
    %53 = arith.addf %52, %51 : vector<16x128xf32>
    %54 = arith.divf %52, %53 : vector<16x128xf32>
    %55 = arith.mulf %49, %54 : vector<16x128xf32>
    %c1_49 = arith.constant 1 : index
    %c0_50 = arith.constant 0 : index
    %56 = vector.load %arg11[%c1_49, %c0_50] : memref<18x64xf32, #tpu.memory_space<vmem>>, vector<16x64xf32>
    tpu.vector_store %arg11[%c1_49, %c0_50], %30 {strides = array<i32>} : memref<18x64xf32, #tpu.memory_space<vmem>>, vector<16x64xf32>,
    %cst_51 = arith.constant 0.000000e+00 : f32
    %57 = vector.broadcast %cst_51 : f32 to vector<16x128xf32>
    %c0_52 = arith.constant 0 : index
    %c0_53 = arith.constant 0 : index
    %58 = vector.load %arg11[%c0_52, %c0_53] : memref<18x64xf32, #tpu.memory_space<vmem>>, vector<16x64xf32>
    %c0_54 = arith.constant 0 : index
    %c0_55 = arith.constant 0 : index
    %c0_56 = arith.constant 0 : index
    %59 = vector.load %arg4[%c0_54, %c0_55, %c0_56] : memref<3x64x128xf32, #tpu.memory_space<vmem>>, vector<1x64x128xf32>
    %60 = vector.shape_cast %59 : vector<1x64x128xf32> to vector<64x128xf32>
    %cst_57 = arith.constant dense<0.000000e+00> : vector<16x128xf32>
    %61 = tpu.matmul %58, %60, %cst_57 {dimension_numbers = #tpu.dot_dimension_numbers<[1], [0], [0], [1], [0, 0, 1, 1], [], []>} : vector<16x64xf32>, vector<64x128xf32>, vector<16x128xf32> -> vector<16x128xf32>
    %62 = arith.addf %57, %61 : vector<16x128xf32>
    %c1_58 = arith.constant 1 : index
    %c0_59 = arith.constant 0 : index
    %63 = vector.load %arg11[%c1_58, %c0_59] : memref<18x64xf32, #tpu.memory_space<vmem>>, vector<16x64xf32>
    %c1_60 = arith.constant 1 : index
    %c0_61 = arith.constant 0 : index
    %c0_62 = arith.constant 0 : index
    %64 = vector.load %arg4[%c1_60, %c0_61, %c0_62] : memref<3x64x128xf32, #tpu.memory_space<vmem>>, vector<1x64x128xf32>
    %65 = vector.shape_cast %64 : vector<1x64x128xf32> to vector<64x128xf32>
    %cst_63 = arith.constant dense<0.000000e+00> : vector<16x128xf32>
    %66 = tpu.matmul %63, %65, %cst_63 {dimension_numbers = #tpu.dot_dimension_numbers<[1], [0], [0], [1], [0, 0, 1, 1], [], []>} : vector<16x64xf32>, vector<64x128xf32>, vector<16x128xf32> -> vector<16x128xf32>
    %67 = arith.addf %62, %66 : vector<16x128xf32>
    %c2_64 = arith.constant 2 : index
    %c0_65 = arith.constant 0 : index
    %68 = vector.load %arg11[%c2_64, %c0_65] : memref<18x64xf32, #tpu.memory_space<vmem>>, vector<16x64xf32>
    %c2_66 = arith.constant 2 : index
    %c0_67 = arith.constant 0 : index
    %c0_68 = arith.constant 0 : index
    %69 = vector.load %arg4[%c2_66, %c0_67, %c0_68] : memref<3x64x128xf32, #tpu.memory_space<vmem>>, vector<1x64x128xf32>
    %70 = vector.shape_cast %69 : vector<1x64x128xf32> to vector<64x128xf32>
    %cst_69 = arith.constant dense<0.000000e+00> : vector<16x128xf32>
    %71 = tpu.matmul %68, %70, %cst_69 {dimension_numbers = #tpu.dot_dimension_numbers<[1], [0], [0], [1], [0, 0, 1, 1], [], []>} : vector<16x64xf32>, vector<64x128xf32>, vector<16x128xf32> -> vector<16x128xf32>
    %72 = arith.addf %67, %71 : vector<16x128xf32>
    %c0_70 = arith.constant 0 : index
    %c0_71 = arith.constant 0 : index
    %73 = vector.load %arg7[%c0_70, %c0_71] : memref<1x128xf32, #tpu.memory_space<vmem>>, vector<1x128xf32>
    %74 = vector.broadcast %73 : vector<1x128xf32> to vector<16x128xf32>
    %75 = arith.addf %72, %74 : vector<16x128xf32>
    %76 = arith.negf %75 : vector<16x128xf32>
    %77 = math.exp %76 : vector<16x128xf32>
    %cst_72 = arith.constant 1.000000e+00 : f32
    %78 = vector.broadcast %cst_72 : f32 to vector<16x128xf32>
    %79 = arith.addf %78, %77 : vector<16x128xf32>
    %80 = arith.divf %78, %79 : vector<16x128xf32>
    %81 = arith.mulf %75, %80 : vector<16x128xf32>
    %82 = arith.addf %81, %55 : vector<16x128xf32>
    %c0_73 = arith.constant 0 : index
    %c0_74 = arith.constant 0 : index
    %83 = vector.load %arg8[%c0_73, %c0_74] : memref<8x16xf32, #tpu.memory_space<vmem>>, vector<8x16xf32>
    %c0_75 = arith.constant 0 : index
    %c0_76 = arith.constant 0 : index
    %84 = vector.load %arg9[%c0_75, %c0_76] : memref<128x64xf32, #tpu.memory_space<vmem>>, vector<128x64xf32>
    %cst_77 = arith.constant dense<0.000000e+00> : vector<16x64xf32>
    %85 = tpu.matmul %82, %84, %cst_77 {dimension_numbers = #tpu.dot_dimension_numbers<[1], [0], [0], [1], [0, 0, 1, 1], [], []>} : vector<16x128xf32>, vector<128x64xf32>, vector<16x64xf32> -> vector<16x64xf32>
    %cst_78 = arith.constant dense<0.000000e+00> : vector<8x64xf32>
    %86 = tpu.matmul %83, %85, %cst_78 {dimension_numbers = #tpu.dot_dimension_numbers<[1], [0], [0], [1], [0, 0, 1, 1], [], []>} : vector<8x16xf32>, vector<16x64xf32>, vector<8x64xf32> -> vector<8x64xf32>
    %c0_79 = arith.constant 0 : index
    %c0_80 = arith.constant 0 : index
    %c0_81 = arith.constant 0 : index
    %87 = vector.load %arg10[%c0_79, %c0_80, %c0_81] : memref<1x8x64xf32, #tpu.memory_space<vmem>>, vector<1x8x64xf32>
    %88 = vector.shape_cast %87 : vector<1x8x64xf32> to vector<8x64xf32>
    %89 = vector.shape_cast %86 : vector<8x64xf32> to vector<1x8x64xf32>
    tpu.vector_store %arg10[%c0_79, %c0_80, %c0_81], %89 {strides = array<i32>} : memref<1x8x64xf32, #tpu.memory_space<vmem>>, vector<1x8x64xf32>,
    return
  }
  func.func @transform_0(%arg0: i32) -> (i32, i32, i32) {
    %c0_i32 = arith.constant 0 : i32
    %c0_i32_0 = arith.constant 0 : i32
    %c0_i32_1 = arith.constant 0 : i32
    return %arg0, %c0_i32, %c0_i32_0 : i32, i32, i32
  }
  func.func @transform_1(%arg0: i32) -> (i32, i32, i32) {
    %c0_i32 = arith.constant 0 : i32
    %c0_i32_0 = arith.constant 0 : i32
    %c0_i32_1 = arith.constant 0 : i32
    %c0_i32_2 = arith.constant 0 : i32
    return %c0_i32, %c0_i32_0, %c0_i32_1 : i32, i32, i32
  }
  func.func @transform_2(%arg0: i32) -> (i32, i32, i32) {
    %c0_i32 = arith.constant 0 : i32
    %c0_i32_0 = arith.constant 0 : i32
    %c0_i32_1 = arith.constant 0 : i32
    %c0_i32_2 = arith.constant 0 : i32
    return %c0_i32, %c0_i32_0, %c0_i32_1 : i32, i32, i32
  }
  func.func @transform_3(%arg0: i32) -> (i32, i32, i32) {
    %c0_i32 = arith.constant 0 : i32
    %c0_i32_0 = arith.constant 0 : i32
    %c0_i32_1 = arith.constant 0 : i32
    %c0_i32_2 = arith.constant 0 : i32
    return %c0_i32, %c0_i32_0, %c0_i32_1 : i32, i32, i32
  }
  func.func @transform_4(%arg0: i32) -> (i32, i32) {
    %c0_i32 = arith.constant 0 : i32
    %c0_i32_0 = arith.constant 0 : i32
    %c0_i32_1 = arith.constant 0 : i32
    return %c0_i32, %c0_i32_0 : i32, i32
  }
  func.func @transform_5(%arg0: i32) -> (i32, i32) {
    %c0_i32 = arith.constant 0 : i32
    %c0_i32_0 = arith.constant 0 : i32
    %c0_i32_1 = arith.constant 0 : i32
    return %c0_i32, %c0_i32_0 : i32, i32
  }
  func.func @transform_6(%arg0: i32) -> (i32, i32) {
    %c0_i32 = arith.constant 0 : i32
    %c0_i32_0 = arith.constant 0 : i32
    %c0_i32_1 = arith.constant 0 : i32
    return %c0_i32, %c0_i32_0 : i32, i32
  }
  func.func @transform_7(%arg0: i32) -> (i32, i32) {
    %c0_i32 = arith.constant 0 : i32
    %c0_i32_0 = arith.constant 0 : i32
    %c0_i32_1 = arith.constant 0 : i32
    return %c0_i32, %c0_i32_0 : i32, i32
  }
  func.func @transform_8(%arg0: i32) -> (i32, i32) {
    %c0_i32 = arith.constant 0 : i32
    %c0_i32_0 = arith.constant 0 : i32
    %c0_i32_1 = arith.constant 0 : i32
    return %c0_i32, %c0_i32_0 : i32, i32
  }
  func.func @transform_9(%arg0: i32) -> (i32, i32, i32) {
    %c0_i32 = arith.constant 0 : i32
    %c0_i32_0 = arith.constant 0 : i32
    %c0_i32_1 = arith.constant 0 : i32
    return %arg0, %c0_i32, %c0_i32_0 : i32, i32, i32
  }
}

</mosaic_0001>

<bundles_post_ra>
// kernel: tile.18
= control target key start
LH: loop header
LB: loop body
LE: loop exit
PB: predicated region body
PF: predicated region fallthrough
CT: control target
= control target key end

     0   :  { %s28_s0 = inlined_call_operand.vmem [shape: f32[4], index: 0, kind: input, shape index: {}]   ;;  %s29_s1 = inlined_call_operand.vmem [shape: f32[16,4], index: 1, kind: output, shape index: {}]  }
   0x1   :  { %v4_v0 = vld [vmem:[%s28_s0] ss:$0 sm:$0xff] }
   0x2   :  { %5 = vst [vmem:[%s29_s1] sm:$0xff] %v4_v0 }
   0x3   :  { %8 = vst [vmem:[%s29_s1 + $0x8] sm:$0xff] %v4_v0 }

// kernel: tile.19
= control target key start
LH: loop header
LB: loop body
LE: loop exit
PB: predicated region body
PF: predicated region fallthrough
CT: control target
= control target key end

     0   :  { %s131_s10 = smov 60   ;;  %s132_s11 = smov 52   ;;  %vm3_vm0 = vcmask 31744   ;;  %vm9_vm1 = vcmask 523744   ;;  %vm15_vm2 = vcmask 490944   ;;  %vm21_vm3 = vcmask 458144   ;;  %s207_s0 = inlined_call_operand.vmem [shape: f32[16,4], index: 0, kind: input, shape index: {}]   ;;  %s208_s1 = inlined_call_operand.vmem [shape: f32[1,64], index: 1, kind: output, shape index: {}]  }
   0x1   :  { %v101_v0 = vld [vmem:[%s207_s0 + $0xf] sm:$0x1]   ;;  %v103_v1 = vld [vmem:[%s207_s0 + $0xd] sm:$0x1]   ;;  %v105_v2 = vld [vmem:[%s207_s0 + $0xb] sm:$0x1]  }
   0x2   :  { %7 = vrot.lane.b32.xlu0 %v101_v0, %s131_s10  ;;  %19 = vrot.lane.b32.xlu1 %v103_v1, %s132_s11  ;;  %s133_s14 = smov 44   ;;  %v102_v3 = vld [vmem:[%s207_s0 + $0xe] sm:$0x1]   ;;  %v104_v4 = vld [vmem:[%s207_s0 + $0xc] sm:$0x1]   ;;  %s134_s19 = smov 56  }
   0x3   :  { %31 = vrot.lane.b32.xlu2 %v105_v2, %s133_s14  ;;  %s135_s20 = smov 48   ;;  %v106_v5 = vld [vmem:[%s207_s0 + $0xa] sm:$0x1]   ;;  %s136_s23 = smov 40   ;;  %v107_v6 = vld [vmem:[%s207_s0 + $0x9] sm:$0x1]  }
   0x4   :  { %v108_v7 = vld [vmem:[%s207_s0 + $0x8] sm:$0x1]   ;;  %s137_s28 = smov 36   ;;  %s138_s29 = smov 32   ;;  %v109_v8 = vld [vmem:[%s207_s0 + $0x7] sm:$0x1]  }
   0x5   :  { %s139_s3 = smov 28   ;;  %v110_v9 = vld [vmem:[%s207_s0 + $0x6] sm:$0x1]   ;;  %v111_v10 = vld [vmem:[%s207_s0 + $0x5] sm:$0x1]   ;;  %s140_s8 = smov 24  }
   0x6   :  { %s141_s9 = smov 20   ;;  %v112_v11 = vld [vmem:[%s207_s0 + $0x4] sm:$0x1]   ;;  %s142_s12 = smov 16   ;;  %v113_v12 = vld [vmem:[%s207_s0 + $0x3] sm:$0x1]  }
   0x7   :  { %v114_v13 = vld [vmem:[%s207_s0 + $0x2] sm:$0x1]   ;;  %s143_s17 = smov 12   ;;  %s144_s18 = smov 8   ;;  %v115_v14 = vld [vmem:[%s207_s0 + $0x1] sm:$0x1]  }
   0x8   :  { %s145_s21 = smov 4   ;;  %v2_v15 = vld [vmem:[%s207_s0] sm:$0x1]   ;;  %vm27_vm4 = vcmask 425344   ;;  %vm33_vm5 = vcmask 392544   ;;  %vm39_vm6 = vcmask 359744  }
   0x9   :  { %4 = vst.msk [vmem:[#allocation0] sm:$0x1] %vm3_vm0, %v2_v15   ;;  %vm45_vm7 = vcmask 326944   ;;  %vm51_vm8 = vcmask 294144   ;;  %vm57_vm9 = vcmask 261344   ;;  %vm63_vm10 = vcmask 228544  }
   0xa   :  { %13 = vrot.lane.b32.xlu0 %v102_v3, %s134_s19  ;;  %25 = vrot.lane.b32.xlu1 %v104_v4, %s135_s20  ;;  %vm69_vm11 = vcmask 195744   ;;  %vm75_vm12 = vcmask 162944   ;;  %vm81_vm13 = vcmask 130144   ;;  %vm87_vm14 = vcmask 97344  }
   0xb   :  { %37 = vrot.lane.b32.xlu2 %v106_v5, %s136_s23  ;;  %vm93_vm15 = vcmask 64544  }
  0x12   :  { %43 = vrot.lane.b32.xlu0 %v107_v6, %s137_s28  ;;  %49 = vrot.lane.b32.xlu1 %v108_v7, %s138_s29 }
  0x13   :  { %55 = vrot.lane.b32.xlu2 %v109_v8, %s139_s3 }
  0x1a   :  { %61 = vrot.lane.b32.xlu0 %v110_v9, %s140_s8  ;;  %67 = vrot.lane.b32.xlu1 %v111_v10, %s141_s9 }
  0x1b   :  { %73 = vrot.lane.b32.xlu2 %v112_v11, %s142_s12 }
  0x22   :  { %79 = vrot.lane.b32.xlu0 %v113_v12, %s143_s17  ;;  %85 = vrot.lane.b32.xlu1 %v114_v13, %s144_s18 }
  0x23   :  { %91 = vrot.lane.b32.xlu2 %v115_v14, %s145_s21 }
  0x5d   :  { %v32_v16 = vpop.permute.xlu2 %31  }
  0x65   :  { %v38_v17 = vpop.permute.xlu2 %37  }
  0x6d   :  { %v56_v18 = vpop.permute.xlu2 %55  }
  0x74   :  { %v8_v19 = vpop.permute.xlu0 %7   ;;  %v20_v20 = vpop.permute.xlu1 %19  }
  0x75   :  { %10 = vst.msk [vmem:[#allocation0] sm:$0x1] %vm9_vm1, %v8_v19   ;;  %v74_v21 = vpop.permute.xlu2 %73  }
  0x7c   :  { %v14_v22 = vpop.permute.xlu0 %13   ;;  %v26_v23 = vpop.permute.xlu1 %25  }
  0x7d   :  { %16 = vst.msk [vmem:[#allocation0] sm:$0x1] %vm15_vm2, %v14_v22   ;;  %v92_v24 = vpop.permute.xlu2 %91  }
  0x7e   :  { %22 = vst.msk [vmem:[#allocation0] sm:$0x1] %vm21_vm3, %v20_v20  }
  0x7f   :  { %28 = vst.msk [vmem:[#allocation0] sm:$0x1] %vm27_vm4, %v26_v23  }
  0x80   :  { %34 = vst.msk [vmem:[#allocation0] sm:$0x1] %vm33_vm5, %v32_v16  }
  0x81   :  { %40 = vst.msk [vmem:[#allocation0] sm:$0x1] %vm39_vm6, %v38_v17  }
  0x84   :  { %v44_v25 = vpop.permute.xlu0 %43   ;;  %v50_v26 = vpop.permute.xlu1 %49  }
  0x85   :  { %46 = vst.msk [vmem:[#allocation0] sm:$0x1] %vm45_vm7, %v44_v25  }
  0x86   :  { %52 = vst.msk [vmem:[#allocation0] sm:$0x1] %vm51_vm8, %v50_v26  }
  0x87   :  { %58 = vst.msk [vmem:[#allocation0] sm:$0x1] %vm57_vm9, %v56_v18  }
  0x8c   :  { %v62_v27 = vpop.permute.xlu0 %61   ;;  %v68_v28 = vpop.permute.xlu1 %67  }
  0x8d   :  { %64 = vst.msk [vmem:[#allocation0] sm:$0x1] %vm63_vm10, %v62_v27  }
  0x8e   :  { %70 = vst.msk [vmem:[#allocation0] sm:$0x1] %vm69_vm11, %v68_v28  }
  0x8f   :  { %76 = vst.msk [vmem:[#allocation0] sm:$0x1] %vm75_vm12, %v74_v21  }
  0x94   :  { %v80_v29 = vpop.permute.xlu0 %79   ;;  %v86_v30 = vpop.permute.xlu1 %85  }
  0x95   :  { %82 = vst.msk [vmem:[#allocation0] sm:$0x1] %vm81_vm13, %v80_v29  }
  0x96   :  { %88 = vst.msk [vmem:[#allocation0] sm:$0x1] %vm87_vm14, %v86_v30  }
  0x97   :  { %94 = vst.msk [vmem:[#allocation0] sm:$0x1] %vm93_vm15, %v92_v24  }
  0x9e   :  { %v97_v31 = vld [vmem:[#allocation0] sm:$0x1] }
  0x9f   :  { %100 = vst [vmem:[%s208_s1] sm:$0x1] %v97_v31 }

// kernel: tile.23
= control target key start
LH: loop header
LB: loop body
LE: loop exit
PB: predicated region body
PF: predicated region fallthrough
CT: control target
= control target key end

     0   :  { %s28_s0 = inlined_call_operand.vmem [shape: f32[8], index: 0, kind: input, shape index: {}]   ;;  %s29_s1 = inlined_call_operand.vmem [shape: f32[16,8], index: 1, kind: output, shape index: {}]  }
   0x1   :  { %v4_v0 = vld [vmem:[%s28_s0] ss:$0 sm:$0xff] }
   0x2   :  { %5 = vst [vmem:[%s29_s1] sm:$0xff] %v4_v0 }
   0x3   :  { %8 = vst [vmem:[%s29_s1 + $0x8] sm:$0xff] %v4_v0 }

// kernel: tile.24
= control target key start
LH: loop header
LB: loop body
LE: loop exit
PB: predicated region body
PF: predicated region fallthrough
CT: control target
= control target key end

     0   :  { %s131_s10 = smov 120   ;;  %s132_s11 = smov 104   ;;  %vm3_vm0 = vcmask 64512   ;;  %vm9_vm1 = vcmask 1048512   ;;  %vm15_vm2 = vcmask 982912   ;;  %vm21_vm3 = vcmask 917312   ;;  %s207_s0 = inlined_call_operand.vmem [shape: f32[16,8], index: 0, kind: input, shape index: {}]   ;;  %s208_s1 = inlined_call_operand.vmem [shape: f32[1,128], index: 1, kind: output, shape index: {}]  }
   0x1   :  { %v101_v0 = vld [vmem:[%s207_s0 + $0xf] sm:$0x1]   ;;  %v103_v1 = vld [vmem:[%s207_s0 + $0xd] sm:$0x1]   ;;  %v105_v2 = vld [vmem:[%s207_s0 + $0xb] sm:$0x1]  }
   0x2   :  { %7 = vrot.lane.b32.xlu0 %v101_v0, %s131_s10  ;;  %19 = vrot.lane.b32.xlu1 %v103_v1, %s132_s11  ;;  %s133_s14 = smov 88   ;;  %v102_v3 = vld [vmem:[%s207_s0 + $0xe] sm:$0x1]   ;;  %v104_v4 = vld [vmem:[%s207_s0 + $0xc] sm:$0x1]   ;;  %s134_s19 = smov 112  }
   0x3   :  { %31 = vrot.lane.b32.xlu2 %v105_v2, %s133_s14  ;;  %s135_s20 = smov 96   ;;  %v106_v5 = vld [vmem:[%s207_s0 + $0xa] sm:$0x1]   ;;  %s136_s23 = smov 80   ;;  %v107_v6 = vld [vmem:[%s207_s0 + $0x9] sm:$0x1]  }
   0x4   :  { %v108_v7 = vld [vmem:[%s207_s0 + $0x8] sm:$0x1]   ;;  %s137_s28 = smov 72   ;;  %s138_s29 = smov 64   ;;  %v109_v8 = vld [vmem:[%s207_s0 + $0x7] sm:$0x1]  }
   0x5   :  { %s139_s3 = smov 56   ;;  %v110_v9 = vld [vmem:[%s207_s0 + $0x6] sm:$0x1]   ;;  %v111_v10 = vld [vmem:[%s207_s0 + $0x5] sm:$0x1]   ;;  %s140_s8 = smov 48  }
   0x6   :  { %s141_s9 = smov 40   ;;  %v112_v11 = vld [vmem:[%s207_s0 + $0x4] sm:$0x1]   ;;  %s142_s12 = smov 32   ;;  %v113_v12 = vld [vmem:[%s207_s0 + $0x3] sm:$0x1]  }
   0x7   :  { %v114_v13 = vld [vmem:[%s207_s0 + $0x2] sm:$0x1]   ;;  %s143_s17 = smov 24   ;;  %s144_s18 = smov 16   ;;  %v115_v14 = vld [vmem:[%s207_s0 + $0x1] sm:$0x1]  }
   0x8   :  { %s145_s21 = smov 8   ;;  %v2_v15 = vld [vmem:[%s207_s0] sm:$0x1]   ;;  %vm27_vm4 = vcmask 851712   ;;  %vm33_vm5 = vcmask 786112   ;;  %vm39_vm6 = vcmask 720512  }
   0x9   :  { %4 = vst.msk [vmem:[#allocation0] sm:$0x1] %vm3_vm0, %v2_v15   ;;  %vm45_vm7 = vcmask 654912   ;;  %vm51_vm8 = vcmask 589312   ;;  %vm57_vm9 = vcmask 523712   ;;  %vm63_vm10 = vcmask 458112  }
   0xa   :  { %13 = vrot.lane.b32.xlu0 %v102_v3, %s134_s19  ;;  %25 = vrot.lane.b32.xlu1 %v104_v4, %s135_s20  ;;  %vm69_vm11 = vcmask 392512   ;;  %vm75_vm12 = vcmask 326912   ;;  %vm81_vm13 = vcmask 261312   ;;  %vm87_vm14 = vcmask 195712  }
   0xb   :  { %37 = vrot.lane.b32.xlu2 %v106_v5, %s136_s23  ;;  %vm93_vm15 = vcmask 130112  }
  0x12   :  { %43 = vrot.lane.b32.xlu0 %v107_v6, %s137_s28  ;;  %49 = vrot.lane.b32.xlu1 %v108_v7, %s138_s29 }
  0x13   :  { %55 = vrot.lane.b32.xlu2 %v109_v8, %s139_s3 }
  0x1a   :  { %61 = vrot.lane.b32.xlu0 %v110_v9, %s140_s8  ;;  %67 = vrot.lane.b32.xlu1 %v111_v10, %s141_s9 }
  0x1b   :  { %73 = vrot.lane.b32.xlu2 %v112_v11, %s142_s12 }
  0x22   :  { %79 = vrot.lane.b32.xlu0 %v113_v12, %s143_s17  ;;  %85 = vrot.lane.b32.xlu1 %v114_v13, %s144_s18 }
  0x23   :  { %91 = vrot.lane.b32.xlu2 %v115_v14, %s145_s21 }
  0x5d   :  { %v32_v16 = vpop.permute.xlu2 %31  }
  0x65   :  { %v38_v17 = vpop.permute.xlu2 %37  }
  0x6d   :  { %v56_v18 = vpop.permute.xlu2 %55  }
  0x74   :  { %v8_v19 = vpop.permute.xlu0 %7   ;;  %v20_v20 = vpop.permute.xlu1 %19  }
  0x75   :  { %10 = vst.msk [vmem:[#allocation0] sm:$0x1] %vm9_vm1, %v8_v19   ;;  %v74_v21 = vpop.permute.xlu2 %73  }
  0x7c   :  { %v14_v22 = vpop.permute.xlu0 %13   ;;  %v26_v23 = vpop.permute.xlu1 %25  }
  0x7d   :  { %16 = vst.msk [vmem:[#allocation0] sm:$0x1] %vm15_vm2, %v14_v22   ;;  %v92_v24 = vpop.permute.xlu2 %91  }
  0x7e   :  { %22 = vst.msk [vmem:[#allocation0] sm:$0x1] %vm21_vm3, %v20_v20  }
  0x7f   :  { %28 = vst.msk [vmem:[#allocation0] sm:$0x1] %vm27_vm4, %v26_v23  }
  0x80   :  { %34 = vst.msk [vmem:[#allocation0] sm:$0x1] %vm33_vm5, %v32_v16  }
  0x81   :  { %40 = vst.msk [vmem:[#allocation0] sm:$0x1] %vm39_vm6, %v38_v17  }
  0x84   :  { %v44_v25 = vpop.permute.xlu0 %43   ;;  %v50_v26 = vpop.permute.xlu1 %49  }
  0x85   :  { %46 = vst.msk [vmem:[#allocation0] sm:$0x1] %vm45_vm7, %v44_v25  }
  0x86   :  { %52 = vst.msk [vmem:[#allocation0] sm:$0x1] %vm51_vm8, %v50_v26  }
  0x87   :  { %58 = vst.msk [vmem:[#allocation0] sm:$0x1] %vm57_vm9, %v56_v18  }
  0x8c   :  { %v62_v27 = vpop.permute.xlu0 %61   ;;  %v68_v28 = vpop.permute.xlu1 %67  }
  0x8d   :  { %64 = vst.msk [vmem:[#allocation0] sm:$0x1] %vm63_vm10, %v62_v27  }
  0x8e   :  { %70 = vst.msk [vmem:[#allocation0] sm:$0x1] %vm69_vm11, %v68_v28  }
  0x8f   :  { %76 = vst.msk [vmem:[#allocation0] sm:$0x1] %vm75_vm12, %v74_v21  }
  0x94   :  { %v80_v29 = vpop.permute.xlu0 %79   ;;  %v86_v30 = vpop.permute.xlu1 %85  }
  0x95   :  { %82 = vst.msk [vmem:[#allocation0] sm:$0x1] %vm81_vm13, %v80_v29  }
  0x96   :  { %88 = vst.msk [vmem:[#allocation0] sm:$0x1] %vm87_vm14, %v86_v30  }
  0x97   :  { %94 = vst.msk [vmem:[#allocation0] sm:$0x1] %vm93_vm15, %v92_v24  }
  0x9e   :  { %v97_v31 = vld [vmem:[#allocation0] sm:$0x1] }
  0x9f   :  { %100 = vst [vmem:[%s208_s1] sm:$0x1] %v97_v31 }

// kernel: block_forward.1
= control target key start
LH: loop header
LB: loop body
LE: loop exit
PB: predicated region body
PF: predicated region fallthrough
CT: control target
= control target key end

     0   :  { %s1117_s30 = smov 0   ;;  %s1466_s0 = inlined_call_operand.vmem [shape: f32[2,16,64], index: 0, kind: input, shape index: {}]   ;;  %s1467_s1 = inlined_call_operand.vmem [shape: f32[3,64,64], index: 1, kind: input, shape index: {}]   ;;  %s1468_s2 = inlined_call_operand.vmem [shape: f32[3,64,128], index: 2, kind: input, shape index: {}]   ;;  %s1469_s3 = inlined_call_operand.vmem [shape: f32[3,64,128], index: 3, kind: input, shape index: {}]   ;;  %s1470_s4 = inlined_call_operand.vmem [shape: f32[1,64], index: 4, kind: input, shape index: {}]   ;;  %s1471_s5 = inlined_call_operand.vmem [shape: f32[1,128], index: 5, kind: input, shape index: {}]   ;;  %s1472_s6 = inlined_call_operand.vmem [shape: f32[1,128], index: 6, kind: input, shape index: {}]   ;;  %s1473_s7 = inlined_call_operand.vmem [shape: f32[8,16], index: 7, kind: input, shape index: {}]   ;;  %s1474_s8 = inlined_call_operand.vmem [shape: f32[128,64], index: 8, kind: input, shape index: {}]   ;;  %s1475_s9 = inlined_call_operand.vmem [shape: f32[2,8,64], index: 9, kind: output, shape index: {}]  }
   0x1 LB: > { %s938_s10 = sadd.s32 4294967295, %s1064_s30   ;;  %p942_p0 = scmp.ge.s32.totalorder %s1064_s30, 1  ;;  %s1064_s30 = sphi %s1117_s30, %s19_s30  }
   0x2   : > { %p287_p1 = scmp.lt.s32.totalorder %s1064_s30, 3 }
   0x4   : > { %p288_p2 = pnand %p942_p0, %p287_p1 }
   0x5   : > { %p322_p3 = scmp.lt.s32.totalorder (!%p288_p2), %s938_s10, 1 }
   0x6   : > { %291 = sbr.rel (%p288_p2) target bundleno = 646 (0x286), region = 56 }
   0xb   : > { %v348_v0 = vld [vmem:[%s1467_s1 + $0x38] sm:$0xff]  ;;  %v347_v1 = vld [vmem:[%s1467_s1 + $0x30] sm:$0xff]  ;;  %vm331_vm0 = vcmask 516096   ;;  %v1066_v5 = vmov 0.0   ;;  %v346_v6 = vld [vmem:[%s1467_s1 + $0x28] sm:$0xff]  ;;  %s1479_s10 = smov (!%p322_p3, %s938_s10), 1 }
   0xc   : > { %v965_v2 = vld [vmem:[%s1467_s1 + $0xb8] sm:$0xff]  ;;  %403 = vmatpush.msra.mxu3 %v348_v0  ;;  %v964_v3 = vld [vmem:[%s1467_s1 + $0xb0] sm:$0xff]  ;;  %332 = vst.msk [vmem:[#allocation2] sm:$0x1] %vm331_vm0, %v1066_v5  ;;  %v963_v7 = vld [vmem:[%s1467_s1 + $0xa8] sm:$0xff]  ;;  %s1021_s14 = sshll.u32 %s1479_s10, 4 }
   0xd   : > { %443 = vmatpush.msra.mxu2 %v965_v2  ;;  %v953_v4 = vld [vmem:[%s1467_s1 + $0x78] sm:$0xff]  ;;  %v952_v8 = vld [vmem:[%s1467_s1 + $0x70] sm:$0xff]  ;;  %333 = vst.msk [vmem:[#allocation2 + $0x11] sm:$0x1] %vm331_vm0, %v1066_v5  ;;  %v951_v9 = vld [vmem:[%s1467_s1 + $0x68] sm:$0xff]  ;;  %vm336_vm1 = vcmask 523264   ;;  %s326_s19 = scalar_lea.vmem %s1466_s0, %s1021_s14 }
   0xe   : > { %374 = vmatpush.msra.mxu0 %v953_v4  ;;  %404 = vmatpush.msra.mxu3 %v347_v1  ;;  %v345_v10 = vld [vmem:[%s1467_s1 + $0x20] sm:$0xff]  ;;  %v344_v13 = vld [vmem:[%s1467_s1 + $0x18] sm:$0xff]  ;;  %v335_v17 = vld [vmem:[%s326_s19 + $0x8] sm:$0xff]  ;;  %s945_s28 = sshll.u32 %s1479_s10, 3 }
   0xf   : > { %444 = vmatpush.msra.mxu2 %v964_v3  ;;  %v962_v11 = vld [vmem:[%s1467_s1 + $0xa0] sm:$0xff]  ;;  %v961_v14 = vld [vmem:[%s1467_s1 + $0x98] sm:$0xff]  ;;  %v343_v18 = vld [vmem:[%s1467_s1 + $0x10] sm:$0xff]  ;;  %338 = vst.msk [vmem:[#allocation2 + $0x9] sm:$0xff] %vm336_vm1, %v335_v17  ;;  %s330_s12 = scalar_lea.vmem %s1475_s9, %s945_s28 }
  0x10   : > { %375 = vmatpush.msra.mxu0 %v952_v8  ;;  %405 = vmatpush.msra.mxu3 %v346_v6  ;;  %v950_v12 = vld [vmem:[%s1467_s1 + $0x60] sm:$0xff]  ;;  %v949_v16 = vld [vmem:[%s1467_s1 + $0x58] sm:$0xff]  ;;  %v960_v19 = vld [vmem:[%s1467_s1 + $0x90] sm:$0xff] }
  0x11   : > { %445 = vmatpush.msra.mxu2 %v963_v7  ;;  %v334_v15 = vld [vmem:[%s326_s19] sm:$0xff]  ;;  %v948_v20 = vld [vmem:[%s1467_s1 + $0x50] sm:$0xff]  ;;  %v342_v21 = vld [vmem:[%s1467_s1 + $0x8] sm:$0xff] }
  0x12   : > { %376 = vmatpush.msra.mxu0 %v951_v9  ;;  %406 = vmatpush.msra.mxu3 %v345_v10  ;;  %337 = vst.msk [vmem:[#allocation2 + $0x1] sm:$0xff] %vm336_vm1, %v334_v15  ;;  %v959_v22 = vld [vmem:[%s1467_s1 + $0x88] sm:$0xff]  ;;  %v989_v24 = vld [vmem:[%s1468_s2 + $0xb8] sm:$0xff]  ;;  %v341_v25 = vld [vmem:[%s1467_s1] sm:$0xff] }
  0x13   : > { %446 = vmatpush.msra.mxu2 %v962_v11  ;;  %v947_v23 = vld [vmem:[%s1467_s1 + $0x48] sm:$0xff]  ;;  %v958_v26 = vld [vmem:[%s1467_s1 + $0x80] sm:$0xff]  ;;  %586 = vmatpush.msra.mxu1 %v989_v24  ;;  %v988_v27 = vld [vmem:[%s1468_s2 + $0xb0] sm:$0xff] }
  0x14   : > { %377 = vmatpush.msra.mxu0 %v950_v12  ;;  %407 = vmatpush.msra.mxu3 %v344_v13  ;;  %v946_v28 = vld [vmem:[%s1467_s1 + $0x40] sm:$0xff]  ;;  %v977_v30 = vld [vmem:[%s1468_s2 + $0x78] sm:$0xff]  ;;  %v987_v33 = vld [vmem:[%s1468_s2 + $0xa8] sm:$0xff] }
  0x15   : > { %447 = vmatpush.msra.mxu2 %v961_v14  ;;  %587 = vmatpush.msra.mxu1 %v988_v27  ;;  %v976_v34 = vld [vmem:[%s1468_s2 + $0x70] sm:$0xff]  ;;  %v513_v35 = vld [vmem:[%s1468_s2 + $0x38] sm:$0xff]  ;;  %v975_v36 = vld [vmem:[%s1468_s2 + $0x68] sm:$0xff] }
  0x16   : > { %378 = vmatpush.msra.mxu0 %v949_v16  ;;  %408 = vmatpush.msra.mxu3 %v343_v18  ;;  %v512_v37 = vld [vmem:[%s1468_s2 + $0x30] sm:$0xff]  ;;  %v974_v38 = vld [vmem:[%s1468_s2 + $0x60] sm:$0xff]  ;;  %v511_v39 = vld [vmem:[%s1468_s2 + $0x28] sm:$0xff] }
  0x17   : > { %448 = vmatpush.msra.mxu2 %v960_v19  ;;  %588 = vmatpush.msra.mxu1 %v987_v33  ;;  %v419_v41 = vld [vmem:[#allocation2 + $0xa] sm:$0xff]  ;;  %v973_v42 = vld [vmem:[%s1468_s2 + $0x58] sm:$0xff]  ;;  %v510_v43 = vld [vmem:[%s1468_s2 + $0x20] sm:$0xff] }
  0x18   : > { %379 = vmatpush.msra.mxu0 %v948_v20  ;;  %409 = vmatpush.msra.mxu3 %v342_v21  ;;  %v350_v44 = vld [vmem:[#allocation2 + $0x9] sm:$0xff]  ;;  %v970_v47 = vld [vmem:[%s1468_s2 + $0x40] sm:$0xff]  ;;  %v509_v48 = vld [vmem:[%s1468_s2 + $0x18] sm:$0xff] }
  0x19   : > { %449 = vmatpush.msra.mxu2 %v959_v22  ;;  %v339_v29 = vld [vmem:[#allocation2] sm:$0xff]  ;;  %v340_v40 = vld [vmem:[#allocation2 + $0x8] sm:$0xff]  ;;  %v972_v45 = vld [vmem:[%s1468_s2 + $0x50] sm:$0xff] }
  0x1a   : > { %380 = vmatpush.msra.mxu0 %v947_v23  ;;  %410 = vmatpush.msra.mxu3 %v341_v25  ;;  %v418_v31 = vld [vmem:[#allocation2 + $0x2] sm:$0xff]  ;;  %v508_v50 = vld [vmem:[%s1468_s2 + $0x10] sm:$0xff]  ;;  %v985_v51 = vld [vmem:[%s1468_s2 + $0x98] sm:$0xff] }
  0x1b   : > { %450 = vmatpush.msra.mxu2 %v958_v26  ;;  %v349_v32 = vld [vmem:[#allocation2 + $0x1] sm:$0xff]  ;;  %956 = vmatmul.msk.f32.vlgmr.msra.gmra.mxu3 %vm336_vm1, %v339_v29  ;;  %v984_v53 = vld [vmem:[%s1468_s2 + $0x90] sm:$0xff]  ;;  %v1001_v58 = vld [vmem:[%s1469_s3 + $0x78] sm:$0xff] }
  0x1c   : > { %966 = vmatmul.msk.f32.vlgmr.msra.gmra.mxu2 %vm336_vm1, %v418_v31  ;;  %381 = vmatpush.msra.mxu0 %v946_v28  ;;  %v971_v46 = vld [vmem:[%s1468_s2 + $0x48] sm:$0xff]  ;;  %v986_v49 = vld [vmem:[%s1468_s2 + $0xa0] sm:$0xff]  ;;  %v660_v59 = vld [vmem:[%s1469_s3 + $0x38] sm:$0xff] }
  0x1d   : > { %531 = vmatpush.msrb.mxu3 %v977_v30  ;;  %954 = vmatmul.msk.f32.vlgmr.msra.gmra.mxu0 %vm336_vm1, %v349_v32  ;;  %v507_v52 = vld [vmem:[%s1468_s2 + $0x8] sm:$0xff]  ;;  %v506_v54 = vld [vmem:[%s1468_s2] sm:$0xff]  ;;  %v1000_v60 = vld [vmem:[%s1469_s3 + $0x70] sm:$0xff] }
  0x1e   : > { %554 = vmatpush.msrb.mxu0 %v513_v35  ;;  %589 = vmatpush.msra.mxu1 %v986_v49  ;;  %v983_v55 = vld [vmem:[%s1468_s2 + $0x88] sm:$0xff]  ;;  %v982_v56 = vld [vmem:[%s1468_s2 + $0x80] sm:$0xff]  ;;  %v659_v61 = vld [vmem:[%s1469_s3 + $0x30] sm:$0xff] }
  0x1f   : > { %532 = vmatpush.msrb.mxu3 %v976_v34  ;;  %686 = vmatpush.msrb.mxu2 %v1001_v58  ;;  %v1031_v1 = vld [vmem:[%s1470_s4] ss:$0 sm:$0xff]  ;;  %v999_v2 = vld [vmem:[%s1469_s3 + $0x68] sm:$0xff]  ;;  %v997_v8 = vld [vmem:[%s1469_s3 + $0x58] sm:$0xff] }
  0x20   : > { %555 = vmatpush.msrb.mxu0 %v512_v37  ;;  %590 = vmatpush.msra.mxu1 %v985_v51  ;;  %v658_v3 = vld [vmem:[%s1469_s3 + $0x28] sm:$0xff]  ;;  %v998_v5 = vld [vmem:[%s1469_s3 + $0x60] sm:$0xff]  ;;  %v656_v9 = vld [vmem:[%s1469_s3 + $0x18] sm:$0xff] }
  0x21   : > { %533 = vmatpush.msrb.mxu3 %v975_v36  ;;  %687 = vmatpush.msrb.mxu2 %v1000_v60  ;;  %v657_v6 = vld [vmem:[%s1469_s3 + $0x20] sm:$0xff]  ;;  %v1013_v10 = vld [vmem:[%s1469_s3 + $0xb8] sm:$0xff]  ;;  %v996_v13 = vld [vmem:[%s1469_s3 + $0x50] sm:$0xff] }
  0x22   : > { %556 = vmatpush.msrb.mxu0 %v511_v39  ;;  %591 = vmatpush.msra.mxu1 %v984_v53  ;;  %v655_v14 = vld [vmem:[%s1469_s3 + $0x10] sm:$0xff]  ;;  %v995_v19 = vld [vmem:[%s1469_s3 + $0x48] sm:$0xff]  ;;  %v994_v23 = vld [vmem:[%s1469_s3 + $0x40] sm:$0xff] }
  0x23   : > { %534 = vmatpush.msrb.mxu3 %v974_v38  ;;  %688 = vmatpush.msrb.mxu2 %v999_v2  ;;  %v1012_v15 = vld [vmem:[%s1469_s3 + $0xb0] sm:$0xff]  ;;  %v654_v20 = vld [vmem:[%s1469_s3 + $0x8] sm:$0xff]  ;;  %v653_v24 = vld [vmem:[%s1469_s3] sm:$0xff] }
  0x24   : > { %957 = vmatmul.msk.f32.gmra.mxu3 %vm336_vm1, %v340_v40  ;;  %967 = vmatmul.msk.f32.gmra.mxu2 %vm336_vm1, %v419_v41  ;;  %v1011_v21 = vld [vmem:[%s1469_s3 + $0xa8] sm:$0xff]  ;;  %v1010_v25 = vld [vmem:[%s1469_s3 + $0xa0] sm:$0xff]  ;;  %v1009_v27 = vld [vmem:[%s1469_s3 + $0x98] sm:$0xff] }
  0x25   : > { %535 = vmatpush.msrb.mxu3 %v973_v42  ;;  %557 = vmatpush.msrb.mxu0 %v510_v43  ;;  %v1008_v28 = vld [vmem:[%s1469_s3 + $0x90] sm:$0xff]  ;;  %v1006_v33 = vld [vmem:[%s1469_s3 + $0x80] sm:$0xff] }
  0x26   : > { %955 = vmatmul.msk.f32.gmra.mxu0 %vm336_vm1, %v350_v44  ;;  %592 = vmatpush.msra.mxu1 %v983_v55 }
  0x27   : > { %536 = vmatpush.msrb.mxu3 %v972_v45  ;;  %558 = vmatpush.msrb.mxu0 %v509_v48 }
  0x28   : > { %593 = vmatpush.msra.mxu1 %v982_v56  ;;  %689 = vmatpush.msrb.mxu2 %v998_v5  ;;  %v835_v5 = vld [vmem:[%s1474_s8 + $0x70] sm:$0xff] }
  0x29   : > { %537 = vmatpush.msrb.mxu3 %v971_v46  ;;  %559 = vmatpush.msrb.mxu0 %v508_v50 }
  0x2a   : > { %990 = vmatmul.msk.f32.vlgmr.msra.gmra.mxu1 %vm336_vm1, %v418_v31  ;;  %690 = vmatpush.msrb.mxu2 %v997_v8 }
  0x2b   : > { %538 = vmatpush.msrb.mxu3 %v970_v47  ;;  %560 = vmatpush.msrb.mxu0 %v507_v52 }
  0x2c   : > { %978 = vmatmul.msk.f32.vlgmr.msrb.gmra.mxu3 %vm336_vm1, %v349_v32  ;;  %691 = vmatpush.msrb.mxu2 %v996_v13  ;;  %v1007_v32 = vld [vmem:[%s1469_s3 + $0x88] sm:$0xff] }
  0x2d   : > { %561 = vmatpush.msrb.mxu0 %v506_v54  ;;  %715 = vmatpush.msra.mxu3 %v660_v59 }
  0x2e   : > { %980 = vmatmul.msk.f32.vlgmr.msrb.gmra.mxu0 %vm336_vm1, %v339_v29  ;;  %692 = vmatpush.msrb.mxu2 %v995_v19  ;;  %v830_v19 = vld [vmem:[%s1474_s8 + $0x48] sm:$0xff] }
  0x2f   : > { %716 = vmatpush.msra.mxu3 %v659_v61  ;;  %755 = vmatpush.msra.mxu0 %v1013_v10  ;;  %v834_v10 = vld [vmem:[%s1474_s8 + $0x68] sm:$0xff] }
  0x30   : > { %693 = vmatpush.msrb.mxu2 %v994_v23  ;;  %v827_v23 = vld [vmem:[%s1474_s8 + $0x30] sm:$0xff] }
  0x31   : > { %717 = vmatpush.msra.mxu3 %v658_v3  ;;  %756 = vmatpush.msra.mxu0 %v1012_v15  ;;  %v832_v15 = vld [vmem:[%s1474_s8 + $0x58] sm:$0xff] }
  0x32   : > { %991 = vmatmul.msk.f32.gmra.mxu1 %vm336_vm1, %v419_v41 }
  0x33   : > { %718 = vmatpush.msra.mxu3 %v657_v6  ;;  %757 = vmatpush.msra.mxu0 %v1011_v21 }
  0x34   : > { %979 = vmatmul.msk.f32.gmra.mxu3 %vm336_vm1, %v350_v44 }
  0x35   : > { %719 = vmatpush.msra.mxu3 %v656_v9  ;;  %758 = vmatpush.msra.mxu0 %v1010_v25  ;;  %v826_v25 = vld [vmem:[%s1474_s8 + $0x28] sm:$0xff] }
  0x36   : > { %981 = vmatmul.msk.f32.gmra.mxu0 %vm336_vm1, %v340_v40 }
  0x37   : > { %720 = vmatpush.msra.mxu3 %v655_v14  ;;  %759 = vmatpush.msra.mxu0 %v1009_v27  ;;  %v825_v27 = vld [vmem:[%s1474_s8 + $0x20] sm:$0xff] }
  0x39   : > { %721 = vmatpush.msra.mxu3 %v654_v20  ;;  %760 = vmatpush.msra.mxu0 %v1008_v28  ;;  %v829_v20 = vld [vmem:[%s1474_s8 + $0x40] sm:$0xff] }
  0x3b   : > { %722 = vmatpush.msra.mxu3 %v653_v24  ;;  %761 = vmatpush.msra.mxu0 %v1007_v32 }
  0x3d   : > { %762 = vmatpush.msra.mxu0 %v1006_v33  ;;  %v1033_v33 = vld [vmem:[%s1472_s6] ss:$0 sm:$0xff] }
  0x9a   : > { %v383_v57 = vpop.f32.mrf.mxu0 }
  0x9e   : > { %v412_v62 = vpop.f32.mrf.mxu3 }
  0x9f   : > { %v452_v63 = vpop.f32.mrf.mxu2  ;;  %v413_v0 = vadd.f32 %v412_v62, %v383_v57 }
  0xa1   : > { %v458_v4 = vadd.f32 %v452_v63, %v413_v0 }
  0xa3   : > { %v1316_v7 = vadd.f32 %v1031_v1, %v458_v4  ;;  %v386_v11 = vpop.f32.mrf.mxu0  ;;  %v836_v4 = vld [vmem:[%s1474_s8 + $0x78] sm:$0xff] }
  0xa4   : > { %837 = vmatpush.msrb.mxu1 %v836_v4 }
  0xa5   : > { %v968_v12 = vmul.f32 -1.442695, %v1316_v7 }
  0xa6   : > { %838 = vmatpush.msrb.mxu1 %v835_v5 }
  0xa7   : > { %v415_v16 = vpop.f32.mrf.mxu3  ;;  %v455_v17 = vpop.f32.mrf.mxu2  ;;  %1034 = vpow2.f32 %v968_v12 }
  0xa8   : > { %v416_v18 = vadd.f32 %v415_v16, %v386_v11  ;;  %v595_v2 = vpop.f32.mrf.mxu1  ;;  %839 = vmatpush.msrb.mxu1 %v834_v10  ;;  %v833_v11 = vld [vmem:[%s1474_s8 + $0x60] sm:$0xff]  ;;  %v831_v16 = vld [vmem:[%s1474_s8 + $0x50] sm:$0xff] }
  0xaa   : > { %v459_v22 = vadd.f32 %v455_v17, %v416_v18  ;;  %840 = vmatpush.msrb.mxu1 %v833_v11 }
  0xac   : > { %v465_v26 = vadd.f32 %v1031_v1, %v459_v22  ;;  %v563_v1 = vpop.f32.mrf.mxu0  ;;  %841 = vmatpush.msrb.mxu1 %v832_v15  ;;  %v828_v22 = vld [vmem:[%s1474_s8 + $0x38] sm:$0xff] }
  0xad   : > { %v1035_v29 = vpop.eup %1034 }
  0xae   : > { %v969_v30 = vmul.f32 -1.442695, %v465_v26  ;;  %v472_v31 = vadd.f32 1.0, %v1035_v29  ;;  %842 = vmatpush.msrb.mxu1 %v831_v16 }
  0xaf   : > { %v540_v0 = vpop.f32.mrf.mxu3 }
  0xb0   : > { %1036 = vpow2.f32 %v969_v30  ;;  %v485_v39 = vand.u32 2147483648, %v472_v31  ;;  %v483_v41 = vand.u32 2147483647, %v472_v31  ;;  %vm479_vm3 = vweird.f32 %v472_v31  ;;  %v598_v14 = vpop.f32.mrf.mxu1  ;;  %843 = vmatpush.msrb.mxu1 %v830_v19 }
  0xb1   : > { %1038 = vrcp.f32 %v472_v31  ;;  %v564_v3 = vadd.f32 %v563_v1, %v540_v0 }
  0xb2   : > { %v486_v44 = vor.u32 1.1754944e-38, %v485_v39  ;;  %vm484_vm5 = vcmp.eq.f32.partialorder %v483_v41, 8.507059e+37  ;;  %844 = vmatpush.msrb.mxu1 %v829_v20 }
  0xb3   : > { %v601_v6 = vadd.f32 %v595_v2, %v564_v3 }
  0xb4   : > { %v566_v9 = vpop.f32.mrf.mxu0  ;;  %845 = vmatpush.msrb.mxu1 %v828_v22 }
  0xb6   : > { %v1037_v34 = vpop.eup %1036  ;;  %846 = vmatpush.msrb.mxu1 %v827_v23 }
  0xb7   : > { %v1039_v35 = vpop.eup %1038  ;;  %v473_v36 = vadd.f32 1.0, %v1037_v34  ;;  %v543_v8 = vpop.f32.mrf.mxu3  ;;  %v823_v34 = vld [vmem:[%s1474_s8 + $0x10] sm:$0xff] }
  0xb8   : > { %v475_v37 = vmul.f32 %v1039_v35, %v472_v31  ;;  %vm480_vm2 = vweird.f32 %v1039_v35  ;;  %v567_v13 = vadd.f32 %v566_v9, %v543_v8  ;;  %847 = vmatpush.msrb.mxu1 %v826_v25  ;;  %v824_v31 = vld [vmem:[%s1474_s8 + $0x18] sm:$0xff] }
  0xb9   : > { %1040 = vrcp.f32 %v473_v36  ;;  %vm481_vm4 = vmor %vm479_vm3, %vm480_vm2  ;;  %v500_v50 = vand.u32 2147483648, %v473_v36  ;;  %v498_v52 = vand.u32 2147483647, %v473_v36  ;;  %vm494_vm7 = vweird.f32 %v473_v36 }
  0xba   : > { %v476_v38 = vsub.f32 1.0, %v475_v37  ;;  %v602_v18 = vadd.f32 %v598_v14, %v567_v13  ;;  %848 = vmatpush.msrb.mxu1 %v825_v27  ;;  %v822_v37 = vld [vmem:[%s1474_s8 + $0x8] sm:$0xff] }
  0xbb   : > { %v501_v54 = vor.u32 1.1754944e-38, %v500_v50  ;;  %vm499_vm9 = vcmp.eq.f32.partialorder %v498_v52, 8.507059e+37 }
  0xbc   : > { %v477_v40 = vmul.f32 %v1039_v35, %v476_v38  ;;  %849 = vmatpush.msrb.mxu1 %v824_v31  ;;  %v821_v38 = vld [vmem:[%s1474_s8] sm:$0xff] }
  0xbe   : > { %v478_v42 = vadd.f32 %v1039_v35, %v477_v40  ;;  %850 = vmatpush.msrb.mxu1 %v823_v34 }
  0xbf   : > { %v1041_v43 = vpop.eup %1040 }
  0xc0   : > { %v482_v45 = vsel %vm481_vm4, %v1039_v35, %v478_v42  ;;  %v490_v46 = vmul.f32 %v1041_v43, %v473_v36  ;;  %vm495_vm6 = vweird.f32 %v1041_v43  ;;  %851 = vmatpush.msrb.mxu1 %v822_v37 }
  0xc1   : > { %v487_v47 = vsel %vm484_vm5, %v486_v44, %v482_v45  ;;  %vm496_vm8 = vmor %vm494_vm7, %vm495_vm6 }
  0xc2   : > { %v504_v48 = vmul.f32 %v487_v47, %v1316_v7  ;;  %v491_v49 = vsub.f32 1.0, %v490_v46  ;;  %v1032_v7 = vld [vmem:[%s1471_s5] ss:$0 sm:$0xff]  ;;  %852 = vmatpush.msrb.mxu1 %v821_v38 }
  0xc3   : > { %v1391_v12 = vadd.f32 %v1032_v7, %v601_v6  ;;  %v1406_v21 = vadd.f32 %v1032_v7, %v602_v18 }
  0xc4   : > { %649 = vst.msk [vmem:[#allocation2 + $0x1] sm:$0xff] %vm336_vm1, %v504_v48  ;;  %v492_v51 = vmul.f32 %v1041_v43, %v491_v49 }
  0xc5   : > { %v992_v17 = vmul.f32 -1.442695, %v1391_v12  ;;  %v993_v24 = vmul.f32 -1.442695, %v1406_v21 }
  0xc6   : > { %v493_v53 = vadd.f32 %v1041_v43, %v492_v51 }
  0xc7   : > { %1042 = vpow2.f32 %v992_v17 }
  0xc8   : > { %v497_v55 = vsel %vm496_vm8, %v1041_v43, %v493_v53  ;;  %1044 = vpow2.f32 %v993_v24 }
  0xc9   : > { %v502_v56 = vsel %vm499_vm9, %v501_v54, %v497_v55 }
  0xca   : > { %v505_v57 = vmul.f32 %v502_v56, %v465_v26 }
  0xcb   : > { %v661_v58 = vld [vmem:[#allocation2 + $0x1] sm:$0xff] }
  0xcc   : > { %v651_v59 = vld [vmem:[#allocation2] sm:$0xff]  ;;  %650 = vst.msk [vmem:[#allocation2 + $0x9] sm:$0xff] %vm336_vm1, %v505_v57  ;;  %1002 = vmatmul.msk.f32.vlgmr.msrb.gmra.mxu2 %vm336_vm1, %v661_v58 }
  0xcd   : > { %1004 = vmatmul.msk.f32.vlgmr.msra.gmra.mxu3 %vm336_vm1, %v651_v59  ;;  %v1043_v26 = vpop.eup %1042 }
  0xce   : > { %v615_v28 = vadd.f32 1.0, %v1043_v26  ;;  %v1045_v39 = vpop.eup %1044 }
  0xcf   : > { %v1436_v41 = vadd.f32 1.0, %v1045_v39 }
  0xd0   : > { %1046 = vrcp.f32 %v615_v28  ;;  %vm622_vm10 = vweird.f32 %v615_v28  ;;  %v628_v59 = vand.u32 2147483648, %v615_v28 }
  0xd1   : > { %vm637_vm15 = vweird.f32 %v1436_v41  ;;  %v641_v15 = vand.u32 2147483647, %v1436_v41  ;;  %v643_v16 = vand.u32 2147483648, %v1436_v41 }
  0xd2   : > { %v629_v2 = vor.u32 1.1754944e-38, %v628_v59 }
  0xd3   : > { %v662_v60 = vld [vmem:[#allocation2 + $0x9] sm:$0xff]  ;;  %vm642_vm6 = vcmp.eq.f32.partialorder %v641_v15, 8.507059e+37  ;;  %v644_v26 = vor.u32 1.1754944e-38, %v643_v16 }
  0xd4   : > { %v652_v61 = vld [vmem:[#allocation2 + $0x8] sm:$0xff]  ;;  %1003 = vmatmul.msk.f32.gmra.mxu2 %vm336_vm1, %v662_v60 }
  0xd5   : > { %v730_v62 = vld [vmem:[#allocation2 + $0x2] sm:$0xff]  ;;  %1005 = vmatmul.msk.f32.gmra.mxu3 %vm336_vm1, %v652_v61  ;;  %v731_v63 = vld [vmem:[#allocation2 + $0xa] sm:$0xff] }
  0xd6   : > { %1014 = vmatmul.msk.f32.vlgmr.msra.gmra.mxu0 %vm336_vm1, %v730_v62  ;;  %v1047_v46 = vpop.eup %1046  ;;  %v626_v62 = vand.u32 2147483647, %v615_v28 }
  0xd7   : > { %v618_v49 = vmul.f32 %v1047_v46, %v615_v28  ;;  %vm623_vm11 = vweird.f32 %v1047_v46 }
  0xd8   : > { %vm624_vm12 = vmor %vm622_vm10, %vm623_vm11  ;;  %vm627_vm13 = vcmp.eq.f32.partialorder %v626_v62, 8.507059e+37  ;;  %vm860_vm11 = vcmask 130048  }
  0xd9   : > { %v619_v53 = vsub.f32 1.0, %v618_v49 }
  0xdb   : > { %v620_v56 = vmul.f32 %v1047_v46, %v619_v53 }
  0xdd   : > { %v621_v61 = vadd.f32 %v1047_v46, %v620_v56 }
  0xde   : > { %1015 = vmatmul.msk.f32.gmra.mxu0 %vm336_vm1, %v731_v63 }
  0xdf   : > { %v625_v4 = vsel %vm624_vm12, %v1047_v46, %v621_v61 }
  0xe0   : > { %v630_v9 = vsel %vm627_vm13, %v629_v2, %v625_v4 }
  0xe1   : > { %v647_v22 = vmul.f32 %v630_v9, %v1391_v12 }
 0x14f   : > { %v695_v29 = vpop.f32.mrf.mxu2 }
 0x150   : > { %v724_v30 = vpop.f32.mrf.mxu3 }
 0x151   : > { %v725_v32 = vadd.f32 %v724_v30, %v695_v29 }
 0x153   : > { %v764_v35 = vpop.f32.mrf.mxu0 }
 0x154   : > { %v770_v36 = vadd.f32 %v764_v35, %v725_v32 }
 0x156   : > { %v776_v40 = vadd.f32 %v1033_v33, %v770_v36 }
 0x157   : > { %v698_v43 = vpop.f32.mrf.mxu2 }
 0x158   : > { %v1016_v42 = vmul.f32 -1.442695, %v776_v40  ;;  %v727_v44 = vpop.f32.mrf.mxu3 }
 0x159   : > { %v728_v45 = vadd.f32 %v727_v44, %v698_v43 }
 0x15a   : > { %1048 = vpow2.f32 %v1016_v42 }
 0x15b   : > { %v767_v47 = vpop.f32.mrf.mxu0  ;;  %1050 = vrcp.f32 %v1436_v41 }
 0x15c   : > { %v771_v48 = vadd.f32 %v767_v47, %v728_v45 }
 0x15e   : > { %v1439_v50 = vadd.f32 %v1033_v33, %v771_v48 }
 0x160   : > { %v1049_v51 = vpop.eup %1048  ;;  %v1017_v52 = vmul.f32 -1.442695, %v1439_v50 }
 0x161   : > { %v784_v54 = vadd.f32 1.0, %v1049_v51  ;;  %v1051_v55 = vpop.eup %1050 }
 0x162   : > { %1052 = vpow2.f32 %v1017_v52  ;;  %v633_v57 = vmul.f32 %v1051_v55, %v1436_v41  ;;  %vm638_vm0 = vweird.f32 %v1051_v55 }
 0x163   : > { %1054 = vrcp.f32 %v784_v54  ;;  %v797_v5 = vand.u32 2147483648, %v784_v54  ;;  %v795_v8 = vand.u32 2147483647, %v784_v54  ;;  %vm791_vm2 = vweird.f32 %v784_v54  ;;  %vm1446_vm5 = vmor %vm637_vm15, %vm638_vm0 }
 0x164   : > { %v634_v0 = vsub.f32 1.0, %v633_v57 }
 0x165   : > { %v798_v13 = vor.u32 1.1754944e-38, %v797_v5  ;;  %vm796_vm4 = vcmp.eq.f32.partialorder %v795_v8, 8.507059e+37 }
 0x166   : > { %v635_v6 = vmul.f32 %v1051_v55, %v634_v0 }
 0x168   : > { %v1053_v58 = vpop.eup %1052  ;;  %v636_v14 = vadd.f32 %v1051_v55, %v635_v6 }
 0x169   : > { %v1055_v60 = vpop.eup %1054  ;;  %v785_v63 = vadd.f32 1.0, %v1053_v58 }
 0x16a   : > { %v787_v1 = vmul.f32 %v1055_v60, %v784_v54  ;;  %vm792_vm14 = vweird.f32 %v1055_v60  ;;  %v640_v25 = vsel %vm1446_vm5, %v1051_v55, %v636_v14 }
 0x16b   : > { %1056 = vrcp.f32 %v785_v63  ;;  %vm793_vm3 = vmor %vm791_vm2, %vm792_vm14  ;;  %v812_v27 = vand.u32 2147483648, %v785_v63  ;;  %v810_v30 = vand.u32 2147483647, %v785_v63  ;;  %vm806_vm8 = vweird.f32 %v785_v63 }
 0x16c   : > { %v788_v3 = vsub.f32 1.0, %v787_v1  ;;  %v645_v32 = vsel %vm642_vm6, %v644_v26, %v640_v25 }
 0x16d   : > { %v813_v33 = vor.u32 1.1754944e-38, %v812_v27  ;;  %vm811_vm10 = vcmp.eq.f32.partialorder %v810_v30, 8.507059e+37  ;;  %v648_v35 = vmul.f32 %v645_v32, %v1406_v21 }
 0x16e   : > { %v789_v7 = vmul.f32 %v1055_v60, %v788_v3 }
 0x170   : > { %v790_v10 = vadd.f32 %v1055_v60, %v789_v7 }
 0x171   : > { %v1057_v11 = vpop.eup %1056 }
 0x172   : > { %v794_v17 = vsel %vm793_vm3, %v1055_v60, %v790_v10  ;;  %v802_v19 = vmul.f32 %v1057_v11, %v785_v63  ;;  %vm807_vm7 = vweird.f32 %v1057_v11 }
 0x173   : > { %v799_v20 = vsel %vm796_vm4, %v798_v13, %v794_v17  ;;  %vm808_vm9 = vmor %vm806_vm8, %vm807_vm7 }
 0x174   : > { %v816_v23 = vmul.f32 %v799_v20, %v776_v40  ;;  %v803_v24 = vsub.f32 1.0, %v802_v19  ;;  %v820_v40 = vld [vmem:[%s1473_s7] sm:$0xff] }
 0x176   : > { %v818_v28 = vadd.f32 %v816_v23, %v647_v22  ;;  %v804_v29 = vmul.f32 %v1057_v11, %v803_v24 }
 0x178   : > { %853 = vmatmul.f32.vlgmr.msrb.gmra.mxu1 %v818_v28  ;;  %v805_v31 = vadd.f32 %v1057_v11, %v804_v29 }
 0x17a   : > { %v809_v12 = vsel %vm808_vm9, %v1057_v11, %v805_v31 }
 0x17b   : > { %v814_v34 = vsel %vm811_vm10, %v813_v33, %v809_v12 }
 0x17c   : > { %v817_v36 = vmul.f32 %v814_v34, %v1439_v50 }
 0x17e   : > { %v819_v37 = vadd.f32 %v817_v36, %v648_v35 }
 0x180   : > { %856 = vmatmul.f32.gmra.mxu1 %v819_v37 }
 0x1f5   : > { %v854_v38 = vpop.f32.mrf.mxu1 }
 0x1fd   : > { %v857_v39 = vpop.f32.mrf.mxu1 }
 0x1fe   : > { %878 = vmatpush.msra.mxu2 %v857_v39 }
 0x200   : > { %879 = vmatpush.msra.mxu2 %v854_v38 }
 0x201   : > { %1018 = vmatmul.msk.f32.vlgmr.msra.gmra.mxu2 %vm860_vm11, %v820_v40 }
 0x284   : > { %v881_v21 = vpop.f32.mrf.mxu2 }
 0x285   : > { %884 = vst.msk [vmem:[%s330_s12] sm:$0xff] %vm336_vm1, %v881_v21 }
 0x286 PF: > { %s19_s30 = sadd.s32 1, %s1064_s30  }
 0x287   : > { %p16_p4 = scmp.ge.s32.totalorder %s19_s30, 4  }
 0x289   :  { %18 = sbr.rel (!%p16_p4) target bundleno = 1 (0x1), region = 92 }

</bundles_post_ra>
